<compile_context>
chip_gen: v5e
topology: v5e:2x2
jax: 0.10.0
libtpu: 0.0.40
codegen_flags: <defaults>
</compile_context>

<pallas_src>
import functools

import jax
import jax.numpy as jnp
from jax.experimental import pallas as pl
from jax.experimental.pallas import tpu as pltpu

INPUT_DIM = 64    # input_dim
LATENT_DIM = 16   # latent_dim
H1 = 256
H2 = 128


def _round_up(n, m):
    return ((n + m - 1) // m) * m


def vae_kernel(x_ref, eps_ref,
               w1_ref, b1_ref, w2_ref, b2_ref,
               wmulv_ref, bmulv_ref,
               wd1_ref, bd1_ref, wd2_ref, bd2_ref, wd3_ref, bd3_ref,
               out_ref):
    L = eps_ref.shape[-1]

    def linear(h, w_ref, b_ref):
        # bf16 operands feed the MXU; accumulation and the bias add stay f32.
        return jnp.dot(h.astype(jnp.bfloat16), w_ref[...],
                       preferred_element_type=jnp.float32) + b_ref[...]

    x = x_ref[...]

    # encoder: Linear -> ReLU -> Linear -> ReLU
    h = jnp.maximum(linear(x, w1_ref, b1_ref), 0.0)
    h = jnp.maximum(linear(h, w2_ref, b2_ref), 0.0)

    # fused mu / logvar heads: one (H2, 2L) matmul, split by static lane slices
    mulv = linear(h, wmulv_ref, bmulv_ref)
    mu = mulv[:, :L]
    logvar = mulv[:, L:]

    # reparameterize: z = mu + eps * exp(0.5 * logvar)   (f32 on VPU/EUP)
    z = mu + eps_ref[...] * jnp.exp(0.5 * logvar)

    # decoder: Linear -> ReLU -> Linear -> ReLU -> Linear -> Sigmoid
    d = jnp.maximum(linear(z, wd1_ref, bd1_ref), 0.0)
    d = jnp.maximum(linear(d, wd2_ref, bd2_ref), 0.0)
    logits = linear(d, wd3_ref, bd3_ref)
    # exp and approx reciprocal both land on the EUP slot; no VALU divide and
    # the 1/inf -> 0 limit handles very negative logits cleanly.
    dec = pl.reciprocal(1.0 + jnp.exp(-logits), approx=True)

    # single lane-dense store: [dec | mu | logvar] -> (bb, D + 2L)
    out_ref[...] = jnp.concatenate([dec, mu, logvar], axis=-1)


@functools.partial(jax.jit, static_argnames=("batch_block",))
def vae_forward(x, eps, params, *, batch_block=256):
    B, D = x.shape
    L = eps.shape[1]

    # Pack the mu/logvar heads and pre-cast matmul weights to bf16 (halves the
    # weight DMA bytes). Biases stay f32: they are added after f32 accumulation.
    wcast = lambda k: params[k].astype(jnp.bfloat16)
    bcast = lambda k: params[k].astype(jnp.float32)
    wmulv = jnp.concatenate([wcast("wmu"), wcast("wlv")], axis=1)
    bmulv = jnp.concatenate([bcast("bmu"), bcast("blv")], axis=1)
    param_list = [wcast("w1"), bcast("b1"), wcast("w2"), bcast("b2"),
                  wmulv, bmulv,
                  wcast("wd1"), bcast("bd1"), wcast("wd2"), bcast("bd2"),
                  wcast("wd3"), bcast("bd3")]

    # Pick a batch tile: as fat as allowed (MXU occupancy), but keep >= 2 grid
    # steps when the batch is big enough so the "parallel" grid axis can shard
    # across v7x's two TensorCores.
    bb = min(batch_block, _round_up(B, 8))
    if B >= 256 and pl.cdiv(B, bb) < 2:
        bb = _round_up(pl.cdiv(B, 2), 8)
    B_pad = _round_up(B, bb)
    if B_pad != B:
        x = jnp.pad(x, ((0, B_pad - B), (0, 0)))
        eps = jnp.pad(eps, ((0, B_pad - B), (0, 0)))

    n_out = D + 2 * L

    def batch_spec(cols):
        # batch-tiled activation/output block
        return pl.BlockSpec((bb, cols), lambda i: (i, 0))

    def param_spec(p):
        # Whole parameter resident in VMEM every grid step (~200 KiB total in
        # bf16, trivial even against v7x's 64 MiB). Constant index_map means the
        # pipeline re-fetches the same block; single-buffering it would save a
        # negligible amount of VMEM so we keep the default for robustness.
        return pl.BlockSpec(p.shape, lambda i: (0,) * p.ndim)

    in_specs = [batch_spec(D), batch_spec(L)] + [param_spec(p) for p in param_list]
    out_specs = batch_spec(n_out)

    packed = pl.pallas_call(
        vae_kernel,
        out_shape=jax.ShapeDtypeStruct((B_pad, n_out), jnp.float32),
        grid_spec=pltpu.PrefetchScalarGridSpec(
            num_scalar_prefetch=0,
            grid=(B_pad // bb,),
            in_specs=in_specs,
            out_specs=out_specs,
        ),
        compiler_params=pltpu.CompilerParams(
            dimension_semantics=("parallel",)),
    )(x, eps, *param_list)

    # wrapper-side split of the lane-dense slab (free layout plumbing)
    decoded = packed[:B, :D]
    mu = packed[:B, D:D + L]
    logvar = packed[:B, D + L:]
    return decoded, mu, logvar


def init_params(key, input_dim=INPUT_DIM, latent_dim=LATENT_DIM):
    """Deterministic synthetic weights. Weights are (in, out); biases are (1, out)."""
    dims = [
        ("w1", (input_dim, H1)), ("b1", (1, H1)),
        ("w2", (H1, H2)),        ("b2", (1, H2)),
        ("wmu", (H2, latent_dim)), ("bmu", (1, latent_dim)),
        ("wlv", (H2, latent_dim)), ("blv", (1, latent_dim)),
        ("wd1", (latent_dim, H2)), ("bd1", (1, H2)),
        ("wd2", (H2, H1)),         ("bd2", (1, H1)),
        ("wd3", (H1, input_dim)),  ("bd3", (1, input_dim)),
    ]
    params = {}
    keys = jax.random.split(key, len(dims))
    for k, (name, shape) in zip(keys, dims):
        fan_in = shape[0] if len(shape) == 2 and shape[0] > 1 else max(shape)
        scale = 1.0 / jnp.sqrt(jnp.float32(fan_in))
        params[name] = (scale * jax.random.normal(k, shape, jnp.float32)).astype(jnp.float32)
    return params


def vae_reference(x, eps, params, *, mxu_dtype=jnp.float32):
    """Plain-JAX reference; mxu_dtype=bfloat16 mirrors the kernel's MXU casts."""
    def lin(h, w, b):
        return jnp.dot(h.astype(mxu_dtype), w.astype(mxu_dtype),
                       preferred_element_type=jnp.float32) + b.astype(jnp.float32)
    relu = lambda v: jnp.maximum(v, 0.0)
    h = relu(lin(x, params["w1"], params["b1"]))
    h = relu(lin(h, params["w2"], params["b2"]))
    mu = lin(h, params["wmu"], params["bmu"])
    logvar = lin(h, params["wlv"], params["blv"])
    z = mu + eps * jnp.exp(0.5 * logvar)
    d = relu(lin(z, params["wd1"], params["bd1"]))
    d = relu(lin(d, params["wd2"], params["bd2"]))
    dec = jax.nn.sigmoid(lin(d, params["wd3"], params["bd3"]))
    return dec, mu, logvar


if __name__ == "__main__":
    key = jax.random.PRNGKey(0)
    k_x, k_eps, k_params = jax.random.split(key, 3)

    B = 20  # deliberately not a multiple of the tile: exercises the pad path
    x = jax.random.uniform(k_x, (B, INPUT_DIM), jnp.float32)          # data in [0,1)
    eps = jax.random.normal(k_eps, (B, LATENT_DIM), jnp.float32)      # torch.randn_like(std)
    params = init_params(k_params)

    decoded, mu, logvar = vae_forward(x, eps, params)
    jax.block_until_ready((decoded, mu, logvar))

    # Tight check against a reference that uses the same bf16 MXU casts.
    ref_bf = vae_reference(x, eps, params, mxu_dtype=jnp.bfloat16)
    for got, want in zip((decoded, mu, logvar), ref_bf):
        assert jnp.allclose(got, want, atol=5e-3, rtol=5e-3)

    # Loose check against the pure-f32 reference (bf16 matmul inputs => ~1e-2 diffs).
    ref_f32 = vae_reference(x, eps, params, mxu_dtype=jnp.float32)
    for got, want in zip((decoded, mu, logvar), ref_f32):
        assert jnp.allclose(got, want, atol=5e-2, rtol=5e-2)

    print("KERNEL_OK")
</pallas_src>

<mosaic_0001>
module attributes {stable_mosaic.version = 11 : i64} {
  func.func @vae_kernel(%arg0: i32, %arg1: memref<24x64xf32, #tpu.memory_space<vmem>>, %arg2: memref<24x16xf32, #tpu.memory_space<vmem>>, %arg3: memref<64x256xbf16, #tpu.memory_space<vmem>>, %arg4: memref<1x256xf32, #tpu.memory_space<vmem>>, %arg5: memref<256x128xbf16, #tpu.memory_space<vmem>>, %arg6: memref<1x128xf32, #tpu.memory_space<vmem>>, %arg7: memref<128x32xbf16, #tpu.memory_space<vmem>>, %arg8: memref<1x32xf32, #tpu.memory_space<vmem>>, %arg9: memref<16x128xbf16, #tpu.memory_space<vmem>>, %arg10: memref<1x128xf32, #tpu.memory_space<vmem>>, %arg11: memref<128x256xbf16, #tpu.memory_space<vmem>>, %arg12: memref<1x256xf32, #tpu.memory_space<vmem>>, %arg13: memref<256x64xbf16, #tpu.memory_space<vmem>>, %arg14: memref<1x64xf32, #tpu.memory_space<vmem>>, %arg15: memref<24x96xf32, #tpu.memory_space<vmem>>) attributes {dimension_semantics = [#tpu.dimension_semantics<parallel>], iteration_bounds = array<i64: 1>, scalar_prefetch = 0 : i64, scratch_operands = 0 : i64, tpu.core_type = #tpu.core_type<tc>, window_params = [{transform_indices = @transform_0, window_bounds = array<i64: 24, 64>}, {transform_indices = @transform_1, window_bounds = array<i64: 24, 16>}, {pipeline_mode = #tpu.pipeline_mode<synchronous>, transform_indices = @transform_2, window_bounds = array<i64: 64, 256>}, {pipeline_mode = #tpu.pipeline_mode<synchronous>, transform_indices = @transform_3, window_bounds = array<i64: 1, 256>}, {pipeline_mode = #tpu.pipeline_mode<synchronous>, transform_indices = @transform_4, window_bounds = array<i64: 256, 128>}, {pipeline_mode = #tpu.pipeline_mode<synchronous>, transform_indices = @transform_5, window_bounds = array<i64: 1, 128>}, {pipeline_mode = #tpu.pipeline_mode<synchronous>, transform_indices = @transform_6, window_bounds = array<i64: 128, 32>}, {pipeline_mode = #tpu.pipeline_mode<synchronous>, transform_indices = @transform_7, window_bounds = array<i64: 1, 32>}, {pipeline_mode = #tpu.pipeline_mode<synchronous>, transform_indices = @transform_8, window_bounds = array<i64: 16, 128>}, {pipeline_mode = #tpu.pipeline_mode<synchronous>, transform_indices = @transform_9, window_bounds = array<i64: 1, 128>}, {pipeline_mode = #tpu.pipeline_mode<synchronous>, transform_indices = @transform_10, window_bounds = array<i64: 128, 256>}, {pipeline_mode = #tpu.pipeline_mode<synchronous>, transform_indices = @transform_11, window_bounds = array<i64: 1, 256>}, {pipeline_mode = #tpu.pipeline_mode<synchronous>, transform_indices = @transform_12, window_bounds = array<i64: 256, 64>}, {pipeline_mode = #tpu.pipeline_mode<synchronous>, transform_indices = @transform_13, window_bounds = array<i64: 1, 64>}, {transform_indices = @transform_14, window_bounds = array<i64: 24, 96>}]} {
    %c0 = arith.constant 0 : index
    %c0_0 = arith.constant 0 : index
    %0 = vector.load %arg1[%c0, %c0_0] : memref<24x64xf32, #tpu.memory_space<vmem>>, vector<24x64xf32>
    %1 = arith.truncf %0 : vector<24x64xf32> to vector<24x64xbf16>
    %c0_1 = arith.constant 0 : index
    %c0_2 = arith.constant 0 : index
    %2 = vector.load %arg3[%c0_1, %c0_2] : memref<64x256xbf16, #tpu.memory_space<vmem>>, vector<64x256xbf16>
    %cst = arith.constant dense<0.000000e+00> : vector<24x256xf32>
    %3 = tpu.matmul %1, %2, %cst {dimension_numbers = #tpu.dot_dimension_numbers<[1], [0], [0], [1], [0, 0, 1, 1], [], []>} : vector<24x64xbf16>, vector<64x256xbf16>, vector<24x256xf32> -> vector<24x256xf32>
    %c0_3 = arith.constant 0 : index
    %c0_4 = arith.constant 0 : index
    %4 = vector.load %arg4[%c0_3, %c0_4] : memref<1x256xf32, #tpu.memory_space<vmem>>, vector<1x256xf32>
    %5 = vector.broadcast %4 : vector<1x256xf32> to vector<24x256xf32>
    %6 = arith.addf %3, %5 : vector<24x256xf32>
    %cst_5 = arith.constant 0.000000e+00 : f32
    %7 = vector.broadcast %cst_5 : f32 to vector<24x256xf32>
    %8 = arith.maximumf %6, %7 : vector<24x256xf32>
    %9 = arith.truncf %8 : vector<24x256xf32> to vector<24x256xbf16>
    %c0_6 = arith.constant 0 : index
    %c0_7 = arith.constant 0 : index
    %10 = vector.load %arg5[%c0_6, %c0_7] : memref<256x128xbf16, #tpu.memory_space<vmem>>, vector<256x128xbf16>
    %cst_8 = arith.constant dense<0.000000e+00> : vector<24x128xf32>
    %11 = tpu.matmul %9, %10, %cst_8 {dimension_numbers = #tpu.dot_dimension_numbers<[1], [0], [0], [1], [0, 0, 1, 1], [], []>} : vector<24x256xbf16>, vector<256x128xbf16>, vector<24x128xf32> -> vector<24x128xf32>
    %c0_9 = arith.constant 0 : index
    %c0_10 = arith.constant 0 : index
    %12 = vector.load %arg6[%c0_9, %c0_10] : memref<1x128xf32, #tpu.memory_space<vmem>>, vector<1x128xf32>
    %13 = vector.broadcast %12 : vector<1x128xf32> to vector<24x128xf32>
    %14 = arith.addf %11, %13 : vector<24x128xf32>
    %cst_11 = arith.constant 0.000000e+00 : f32
    %15 = vector.broadcast %cst_11 : f32 to vector<24x128xf32>
    %16 = arith.maximumf %14, %15 : vector<24x128xf32>
    %17 = arith.truncf %16 : vector<24x128xf32> to vector<24x128xbf16>
    %c0_12 = arith.constant 0 : index
    %c0_13 = arith.constant 0 : index
    %18 = vector.load %arg7[%c0_12, %c0_13] : memref<128x32xbf16, #tpu.memory_space<vmem>>, vector<128x32xbf16>
    %cst_14 = arith.constant dense<0.000000e+00> : vector<24x32xf32>
    %19 = tpu.matmul %17, %18, %cst_14 {dimension_numbers = #tpu.dot_dimension_numbers<[1], [0], [0], [1], [0, 0, 1, 1], [], []>} : vector<24x128xbf16>, vector<128x32xbf16>, vector<24x32xf32> -> vector<24x32xf32>
    %c0_15 = arith.constant 0 : index
    %c0_16 = arith.constant 0 : index
    %20 = vector.load %arg8[%c0_15, %c0_16] : memref<1x32xf32, #tpu.memory_space<vmem>>, vector<1x32xf32>
    %21 = vector.broadcast %20 : vector<1x32xf32> to vector<24x32xf32>
    %22 = arith.addf %19, %21 : vector<24x32xf32>
    %23 = vector.extract_strided_slice %22 {offsets = [0, 0], sizes = [24, 16], strides = [1, 1]} : vector<24x32xf32> to vector<24x16xf32>
    %24 = vector.extract_strided_slice %22 {offsets = [0, 16], sizes = [24, 16], strides = [1, 1]} : vector<24x32xf32> to vector<24x16xf32>
    %c0_17 = arith.constant 0 : index
    %c0_18 = arith.constant 0 : index
    %25 = vector.load %arg2[%c0_17, %c0_18] : memref<24x16xf32, #tpu.memory_space<vmem>>, vector<24x16xf32>
    %cst_19 = arith.constant 5.000000e-01 : f32
    %26 = vector.broadcast %cst_19 : f32 to vector<24x16xf32>
    %27 = arith.mulf %26, %24 : vector<24x16xf32>
    %28 = math.exp %27 : vector<24x16xf32>
    %29 = arith.mulf %25, %28 : vector<24x16xf32>
    %30 = arith.addf %23, %29 : vector<24x16xf32>
    %31 = arith.truncf %30 : vector<24x16xf32> to vector<24x16xbf16>
    %c0_20 = arith.constant 0 : index
    %c0_21 = arith.constant 0 : index
    %32 = vector.load %arg9[%c0_20, %c0_21] : memref<16x128xbf16, #tpu.memory_space<vmem>>, vector<16x128xbf16>
    %cst_22 = arith.constant dense<0.000000e+00> : vector<24x128xf32>
    %33 = tpu.matmul %31, %32, %cst_22 {dimension_numbers = #tpu.dot_dimension_numbers<[1], [0], [0], [1], [0, 0, 1, 1], [], []>} : vector<24x16xbf16>, vector<16x128xbf16>, vector<24x128xf32> -> vector<24x128xf32>
    %c0_23 = arith.constant 0 : index
    %c0_24 = arith.constant 0 : index
    %34 = vector.load %arg10[%c0_23, %c0_24] : memref<1x128xf32, #tpu.memory_space<vmem>>, vector<1x128xf32>
    %35 = vector.broadcast %34 : vector<1x128xf32> to vector<24x128xf32>
    %36 = arith.addf %33, %35 : vector<24x128xf32>
    %cst_25 = arith.constant 0.000000e+00 : f32
    %37 = vector.broadcast %cst_25 : f32 to vector<24x128xf32>
    %38 = arith.maximumf %36, %37 : vector<24x128xf32>
    %39 = arith.truncf %38 : vector<24x128xf32> to vector<24x128xbf16>
    %c0_26 = arith.constant 0 : index
    %c0_27 = arith.constant 0 : index
    %40 = vector.load %arg11[%c0_26, %c0_27] : memref<128x256xbf16, #tpu.memory_space<vmem>>, vector<128x256xbf16>
    %cst_28 = arith.constant dense<0.000000e+00> : vector<24x256xf32>
    %41 = tpu.matmul %39, %40, %cst_28 {dimension_numbers = #tpu.dot_dimension_numbers<[1], [0], [0], [1], [0, 0, 1, 1], [], []>} : vector<24x128xbf16>, vector<128x256xbf16>, vector<24x256xf32> -> vector<24x256xf32>
    %c0_29 = arith.constant 0 : index
    %c0_30 = arith.constant 0 : index
    %42 = vector.load %arg12[%c0_29, %c0_30] : memref<1x256xf32, #tpu.memory_space<vmem>>, vector<1x256xf32>
    %43 = vector.broadcast %42 : vector<1x256xf32> to vector<24x256xf32>
    %44 = arith.addf %41, %43 : vector<24x256xf32>
    %cst_31 = arith.constant 0.000000e+00 : f32
    %45 = vector.broadcast %cst_31 : f32 to vector<24x256xf32>
    %46 = arith.maximumf %44, %45 : vector<24x256xf32>
    %47 = arith.truncf %46 : vector<24x256xf32> to vector<24x256xbf16>
    %c0_32 = arith.constant 0 : index
    %c0_33 = arith.constant 0 : index
    %48 = vector.load %arg13[%c0_32, %c0_33] : memref<256x64xbf16, #tpu.memory_space<vmem>>, vector<256x64xbf16>
    %cst_34 = arith.constant dense<0.000000e+00> : vector<24x64xf32>
    %49 = tpu.matmul %47, %48, %cst_34 {dimension_numbers = #tpu.dot_dimension_numbers<[1], [0], [0], [1], [0, 0, 1, 1], [], []>} : vector<24x256xbf16>, vector<256x64xbf16>, vector<24x64xf32> -> vector<24x64xf32>
    %c0_35 = arith.constant 0 : index
    %c0_36 = arith.constant 0 : index
    %50 = vector.load %arg14[%c0_35, %c0_36] : memref<1x64xf32, #tpu.memory_space<vmem>>, vector<1x64xf32>
    %51 = vector.broadcast %50 : vector<1x64xf32> to vector<24x64xf32>
    %52 = arith.addf %49, %51 : vector<24x64xf32>
    %cst_37 = arith.constant 0.000000e+00 : f32
    %53 = vector.broadcast %cst_37 : f32 to vector<24x64xf32>
    %54 = arith.subf %53, %52 : vector<24x64xf32>
    %55 = math.exp %54 : vector<24x64xf32>
    %cst_38 = arith.constant 1.000000e+00 : f32
    %56 = vector.broadcast %cst_38 : f32 to vector<24x64xf32>
    %57 = arith.addf %56, %55 : vector<24x64xf32>
    %58 = tpu.reciprocal %57 {approx = true} : vector<24x64xf32> -> vector<24x64xf32>
    %59 = tpu.concatenate %58, %23, %24 in 1 : vector<24x64xf32>, vector<24x16xf32>, vector<24x16xf32> -> vector<24x96xf32>
    %c0_39 = arith.constant 0 : index
    %c0_40 = arith.constant 0 : index
    %60 = vector.load %arg15[%c0_39, %c0_40] : memref<24x96xf32, #tpu.memory_space<vmem>>, vector<24x96xf32>
    tpu.vector_store %arg15[%c0_39, %c0_40], %59 {strides = array<i32>} : memref<24x96xf32, #tpu.memory_space<vmem>>, vector<24x96xf32>,
    return
  }
  func.func @transform_0(%arg0: i32) -> (i32, i32) {
    %c0_i32 = arith.constant 0 : i32
    %c0_i32_0 = arith.constant 0 : i32
    return %arg0, %c0_i32 : i32, i32
  }
  func.func @transform_1(%arg0: i32) -> (i32, i32) {
    %c0_i32 = arith.constant 0 : i32
    %c0_i32_0 = arith.constant 0 : i32
    return %arg0, %c0_i32 : i32, i32
  }
  func.func @transform_2(%arg0: i32) -> (i32, i32) {
    %c0_i32 = arith.constant 0 : i32
    %c0_i32_0 = arith.constant 0 : i32
    %c0_i32_1 = arith.constant 0 : i32
    return %c0_i32, %c0_i32_0 : i32, i32
  }
  func.func @transform_3(%arg0: i32) -> (i32, i32) {
    %c0_i32 = arith.constant 0 : i32
    %c0_i32_0 = arith.constant 0 : i32
    %c0_i32_1 = arith.constant 0 : i32
    return %c0_i32, %c0_i32_0 : i32, i32
  }
  func.func @transform_4(%arg0: i32) -> (i32, i32) {
    %c0_i32 = arith.constant 0 : i32
    %c0_i32_0 = arith.constant 0 : i32
    %c0_i32_1 = arith.constant 0 : i32
    return %c0_i32, %c0_i32_0 : i32, i32
  }
  func.func @transform_5(%arg0: i32) -> (i32, i32) {
    %c0_i32 = arith.constant 0 : i32
    %c0_i32_0 = arith.constant 0 : i32
    %c0_i32_1 = arith.constant 0 : i32
    return %c0_i32, %c0_i32_0 : i32, i32
  }
  func.func @transform_6(%arg0: i32) -> (i32, i32) {
    %c0_i32 = arith.constant 0 : i32
    %c0_i32_0 = arith.constant 0 : i32
    %c0_i32_1 = arith.constant 0 : i32
    return %c0_i32, %c0_i32_0 : i32, i32
  }
  func.func @transform_7(%arg0: i32) -> (i32, i32) {
    %c0_i32 = arith.constant 0 : i32
    %c0_i32_0 = arith.constant 0 : i32
    %c0_i32_1 = arith.constant 0 : i32
    return %c0_i32, %c0_i32_0 : i32, i32
  }
  func.func @transform_8(%arg0: i32) -> (i32, i32) {
    %c0_i32 = arith.constant 0 : i32
    %c0_i32_0 = arith.constant 0 : i32
    %c0_i32_1 = arith.constant 0 : i32
    return %c0_i32, %c0_i32_0 : i32, i32
  }
  func.func @transform_9(%arg0: i32) -> (i32, i32) {
    %c0_i32 = arith.constant 0 : i32
    %c0_i32_0 = arith.constant 0 : i32
    %c0_i32_1 = arith.constant 0 : i32
    return %c0_i32, %c0_i32_0 : i32, i32
  }
  func.func @transform_10(%arg0: i32) -> (i32, i32) {
    %c0_i32 = arith.constant 0 : i32
    %c0_i32_0 = arith.constant 0 : i32
    %c0_i32_1 = arith.constant 0 : i32
    return %c0_i32, %c0_i32_0 : i32, i32
  }
  func.func @transform_11(%arg0: i32) -> (i32, i32) {
    %c0_i32 = arith.constant 0 : i32
    %c0_i32_0 = arith.constant 0 : i32
    %c0_i32_1 = arith.constant 0 : i32
    return %c0_i32, %c0_i32_0 : i32, i32
  }
  func.func @transform_12(%arg0: i32) -> (i32, i32) {
    %c0_i32 = arith.constant 0 : i32
    %c0_i32_0 = arith.constant 0 : i32
    %c0_i32_1 = arith.constant 0 : i32
    return %c0_i32, %c0_i32_0 : i32, i32
  }
  func.func @transform_13(%arg0: i32) -> (i32, i32) {
    %c0_i32 = arith.constant 0 : i32
    %c0_i32_0 = arith.constant 0 : i32
    %c0_i32_1 = arith.constant 0 : i32
    return %c0_i32, %c0_i32_0 : i32, i32
  }
  func.func @transform_14(%arg0: i32) -> (i32, i32) {
    %c0_i32 = arith.constant 0 : i32
    %c0_i32_0 = arith.constant 0 : i32
    return %arg0, %c0_i32 : i32, i32
  }
}

</mosaic_0001>

<bundles_post_ra>
// kernel: vae_forward.1
= control target key start
LH: loop header
LB: loop body
LE: loop exit
PB: predicated region body
PF: predicated region fallthrough
CT: control target
= control target key end

     0   :  { %vm107_vm0 = vcmask 523264   ;;  %s1206_s16 = smov 64   ;;  %s1207_s17 = smov 112   ;;  %vm463_vm1 = vcmask 130048   ;;  %vm839_vm2 = vcmask 654336   ;;  %vm843_vm3 = vcmask 785408   ;;  %s1618_s2 = inlined_call_operand.vmem [shape: bf16[64,256], index: 2, kind: input, shape index: {}]   ;;  %s1619_s4 = inlined_call_operand.vmem [shape: bf16[256,128], index: 4, kind: input, shape index: {}]   ;;  %s1620_s0 = inlined_call_operand.vmem [shape: f32[24,64], index: 0, kind: input, shape index: {}]   ;;  %s1621_s5 = inlined_call_operand.vmem [shape: f32[1,128], index: 5, kind: input, shape index: {}]   ;;  %s1622_s3 = inlined_call_operand.vmem [shape: f32[1,256], index: 3, kind: input, shape index: {}]   ;;  %s1623_s6 = inlined_call_operand.vmem [shape: bf16[128,32], index: 6, kind: input, shape index: {}]   ;;  %s1624_s7 = inlined_call_operand.vmem [shape: f32[1,32], index: 7, kind: input, shape index: {}]   ;;  %s1625_s9 = inlined_call_operand.vmem [shape: f32[1,128], index: 9, kind: input, shape index: {}]   ;;  %s1626_s8 = inlined_call_operand.vmem [shape: bf16[16,128], index: 8, kind: input, shape index: {}]   ;;  %s1627_s10 = inlined_call_operand.vmem [shape: bf16[128,256], index: 10, kind: input, shape index: {}]   ;;  %s1628_s1 = inlined_call_operand.vmem [shape: f32[24,16], index: 1, kind: input, shape index: {}]   ;;  %s1629_s12 = inlined_call_operand.vmem [shape: bf16[256,64], index: 12, kind: input, shape index: {}]   ;;  %s1630_s13 = inlined_call_operand.vmem [shape: f32[1,64], index: 13, kind: input, shape index: {}]   ;;  %s1631_s11 = inlined_call_operand.vmem [shape: f32[1,256], index: 11, kind: input, shape index: {}]   ;;  %s1632_s14 = inlined_call_operand.vmem [shape: f32[24,96], index: 14, kind: output, shape index: {}]  }
   0x1   :  { %v877_v0 = vld [vmem:[%s1618_s2 + $0x30] sm:$0xf]  ;;  %v1124_v1 = vld [vmem:[%s1618_s2 + $0x34] sm:$0xf0]  ;;  %v1123_v2 = vld [vmem:[%s1618_s2 + $0x34] sm:$0xf] }
   0x2   :  { %v878_v3 = vor.u32 %v1124_v1, %v877_v0  ;;  %v879_v4 = vld [vmem:[%s1618_s2 + $0x38] sm:$0xf0]  ;;  %v869_v5 = vld [vmem:[%s1618_s2 + $0x20] sm:$0xf]  ;;  %v1122_v6 = vld [vmem:[%s1618_s2 + $0x24] sm:$0xf0] }
   0x3   :  { %v882_v7 = vor.u32 %v1123_v2, %v879_v4  ;;  %v1121_v8 = vld [vmem:[%s1618_s2 + $0x24] sm:$0xf]  ;;  %v871_v9 = vld [vmem:[%s1618_s2 + $0x28] sm:$0xf0]  ;;  %v870_v10 = vor.u32 %v1122_v6, %v869_v5  ;;  %v861_v12 = vld [vmem:[%s1618_s2 + $0x10] sm:$0xf] }
   0x4   :  { %118 = vmatpush.bf16.msra.mxu0 %v878_v3  ;;  %v874_v11 = vor.u32 %v1121_v8, %v871_v9  ;;  %v1120_v13 = vld [vmem:[%s1618_s2 + $0x14] sm:$0xf0]  ;;  %v1119_v14 = vld [vmem:[%s1618_s2 + $0x14] sm:$0xf]  ;;  %v863_v15 = vld [vmem:[%s1618_s2 + $0x18] sm:$0xf0] }
   0x5   :  { %136 = vmatpush.bf16.msra.mxu1 %v882_v7  ;;  %v1132_v16 = vld [vmem:[%s1619_s4 + $0x38] sm:$0xff]  ;;  %v862_v18 = vor.u32 %v1120_v13, %v861_v12  ;;  %v866_v19 = vor.u32 %v1119_v14, %v863_v15  ;;  %v853_v20 = vld [vmem:[%s1618_s2] sm:$0xf]  ;;  %v1118_v21 = vld [vmem:[%s1618_s2 + $0x4] sm:$0xf0] }
   0x6   :  { %v1140_v17 = vld [vmem:[%s1619_s4 + $0x78] sm:$0xff]  ;;  %292 = vmatpush.bf16.msra.mxu2 %v1132_v16  ;;  %v1131_v22 = vld [vmem:[%s1619_s4 + $0x30] sm:$0xff]  ;;  %v1117_v23 = vld [vmem:[%s1618_s2 + $0x4] sm:$0xf]  ;;  %v854_v26 = vor.u32 %v1118_v21, %v853_v20 }
   0x7   :  { %v855_v24 = vld [vmem:[%s1618_s2 + $0x8] sm:$0xf0]  ;;  %310 = vmatpush.bf16.msra.mxu3 %v1140_v17  ;;  %v1139_v25 = vld [vmem:[%s1619_s4 + $0x70] sm:$0xff]  ;;  %v48_v27 = vld [vmem:[%s1620_s0] sm:$0xff] }
   0x8   :  { %119 = vmatpush.bf16.msra.mxu0 %v870_v10  ;;  %v49_v28 = vld [vmem:[%s1620_s0 + $0x8] sm:$0xff]  ;;  %v858_v29 = vor.u32 %v1117_v23, %v855_v24  ;;  %v1129_v33 = vld [vmem:[%s1619_s4 + $0x20] sm:$0xff]  ;;  %v50_v35 = vld [vmem:[%s1620_s0 + $0x10] sm:$0xff] }
   0x9   :  { %137 = vmatpush.bf16.msra.mxu1 %v874_v11  ;;  %v1130_v30 = vld [vmem:[%s1619_s4 + $0x28] sm:$0xff]  ;;  %v51_v32 = vpack.c.bf16 %v49_v28, %v48_v27  ;;  %v1137_v34 = vld [vmem:[%s1619_s4 + $0x60] sm:$0xff]  ;;  %v52_v36 = vpack.c.bf16 %v50_v35, %v50_v35  ;;  %v1128_v37 = vld [vmem:[%s1619_s4 + $0x18] sm:$0xff] }
   0xa   :  { %293 = vmatpush.bf16.msra.mxu2 %v1131_v22  ;;  %v1138_v31 = vld [vmem:[%s1619_s4 + $0x68] sm:$0xff]  ;;  %v1136_v38 = vld [vmem:[%s1619_s4 + $0x58] sm:$0xff]  ;;  %v1127_v39 = vld [vmem:[%s1619_s4 + $0x10] sm:$0xff] }
   0xb   :  { %311 = vmatpush.bf16.msra.mxu3 %v1139_v25  ;;  %v1135_v40 = vld [vmem:[%s1619_s4 + $0x50] sm:$0xff]  ;;  %v1126_v41 = vld [vmem:[%s1619_s4 + $0x8] sm:$0xff]  ;;  %v1125_v43 = vld [vmem:[%s1619_s4] sm:$0xff] }
   0xc   :  { %120 = vmatpush.bf16.msra.mxu0 %v862_v18  ;;  %v1134_v42 = vld [vmem:[%s1619_s4 + $0x48] sm:$0xff]  ;;  %v1133_v44 = vld [vmem:[%s1619_s4 + $0x40] sm:$0xff]  ;;  %v1148_v47 = vld [vmem:[%s1623_s6 + $0x38] sm:$0xff] }
   0xd   :  { %138 = vmatpush.bf16.msra.mxu1 %v866_v19  ;;  %v61_v45 = vld [vmem:[%s1622_s3] sm:$0x3]  ;;  %v1147_v49 = vld [vmem:[%s1623_s6 + $0x30] sm:$0xff]  ;;  %v1146_v52 = vld [vmem:[%s1623_s6 + $0x28] sm:$0xff] }
   0xe   :  { %294 = vmatpush.bf16.msra.mxu2 %v1130_v30  ;;  %v63_v50 = vperm.slane %v61_v45, 0  ;;  %v64_v51 = vperm.slane %v61_v45, 1  ;;  %v1145_v59 = vld [vmem:[%s1623_s6 + $0x20] sm:$0xff]  ;;  %v1144_v12 = vld [vmem:[%s1623_s6 + $0x18] sm:$0xff]  ;;  %v1143_v13 = vld [vmem:[%s1623_s6 + $0x10] sm:$0xff] }
   0xf   :  { %312 = vmatpush.bf16.msra.mxu3 %v1138_v31  ;;  %v1142_v14 = vld [vmem:[%s1623_s6 + $0x8] sm:$0xff]  ;;  %v1141_v15 = vld [vmem:[%s1623_s6] sm:$0xff] }
  0x10   :  { %121 = vmatpush.bf16.msra.mxu0 %v854_v26  ;;  %v1184_v17 = vld [vmem:[%s1621_s5] ss:$0 sm:$0xff] }
  0x11   :  { %139 = vmatpush.bf16.msra.mxu1 %v858_v29 }
  0x12   :  { %295 = vmatpush.bf16.msra.mxu2 %v1129_v33 }
  0x13   :  { %883 = vmatmul.msk.bf16.vlgmr.msra.gmra.mxu0 %vm107_vm0, %v51_v32  ;;  %313 = vmatpush.bf16.msra.mxu3 %v1137_v34 }
  0x14   :  { %885 = vmatmul.msk.bf16.vlgmr.msra.gmra.mxu1 %vm107_vm0, %v51_v32  ;;  %401 = vmatpush.bf16.msrb.mxu0 %v1148_v47 }
  0x16   :  { %296 = vmatpush.bf16.msra.mxu2 %v1128_v37 }
  0x17   :  { %314 = vmatpush.bf16.msra.mxu3 %v1136_v38 }
  0x18   :  { %402 = vmatpush.bf16.msrb.mxu0 %v1147_v49 }
  0x1a   :  { %297 = vmatpush.bf16.msra.mxu2 %v1127_v39 }
  0x1b   :  { %315 = vmatpush.bf16.msra.mxu3 %v1135_v40 }
  0x1c   :  { %403 = vmatpush.bf16.msrb.mxu0 %v1146_v52 }
  0x1e   :  { %298 = vmatpush.bf16.msra.mxu2 %v1126_v41 }
  0x1f   :  { %316 = vmatpush.bf16.msra.mxu3 %v1134_v42 }
  0x20   :  { %404 = vmatpush.bf16.msrb.mxu0 %v1145_v59  ;;  %v1049_v59 = vld [vmem:[%s1627_s10 + $0x78] sm:$0xf0] }
  0x22   :  { %299 = vmatpush.bf16.msra.mxu2 %v1125_v43 }
  0x23   :  { %884 = vmatmul.msk.bf16.gmra.mxu0 %vm107_vm0, %v52_v36  ;;  %317 = vmatpush.bf16.msra.mxu3 %v1133_v44 }
  0x24   :  { %886 = vmatmul.msk.bf16.gmra.mxu1 %vm107_vm0, %v52_v36  ;;  %405 = vmatpush.bf16.msrb.mxu0 %v1144_v12  ;;  %v1185_v36 = vld [vmem:[%s1624_s7] ss:$0 sm:$0xff] }
  0x25   :  { %v1023_v12 = vld [vmem:[%s1627_s10 + $0x40] sm:$0xf] }
  0x28   :  { %406 = vmatpush.bf16.msrb.mxu0 %v1143_v13  ;;  %v1159_v13 = vld [vmem:[%s1627_s10 + $0x44] sm:$0xf0] }
  0x2c   :  { %407 = vmatpush.bf16.msrb.mxu0 %v1142_v14 }
  0x30   :  { %408 = vmatpush.bf16.msrb.mxu0 %v1141_v15  ;;  %v1158_v15 = vld [vmem:[%s1627_s10 + $0x44] sm:$0xf] }
  0x90   :  { %v123_v46 = vpop.f32.mrf.mxu0 }
  0x91   :  { %v141_v48 = vpop.f32.mrf.mxu1  ;;  %v124_v53 = vadd.f32 %v123_v46, %v63_v50 }
  0x92   :  { %v142_v54 = vadd.f32 %v141_v48, %v64_v51 }
  0x93   :  { %v150_v60 = vmax.f32 %v124_v53, 0.0  ;;  %v1149_v53 = vld [vmem:[%s1626_s8] sm:$0xff] }
  0x94   :  { %v151_v62 = vmax.f32 %v142_v54, 0.0  ;;  %477 = vmatpush.bf16.msrb.mxu1 %v1149_v53  ;;  %v1047_v54 = vld [vmem:[%s1627_s10 + $0x70] sm:$0xf]  ;;  %v1181_v53 = vld [vmem:[%s1629_s12 + $0x78] sm:$0xff] }
  0x98   :  { %v125_v55 = vpop.f32.mrf.mxu0  ;;  %791 = vmatpush.bf16.msra.mxu1 %v1181_v53 }
  0x99   :  { %v126_v56 = vadd.f32 %v125_v55, %v63_v50  ;;  %v143_v57 = vpop.f32.mrf.mxu1  ;;  %v1165_v55 = vld [vmem:[%s1627_s10 + $0x74] sm:$0xf0] }
  0x9a   :  { %v144_v58 = vadd.f32 %v143_v57, %v64_v51 }
  0x9b   :  { %v152_v61 = vmax.f32 %v126_v56, 0.0  ;;  %v1164_v56 = vld [vmem:[%s1627_s10 + $0x74] sm:$0xf] }
  0x9c   :  { %v153_v63 = vmax.f32 %v144_v58, 0.0  ;;  %v1048_v58 = vor.u32 %v1165_v55, %v1047_v54  ;;  %v1172_v55 = vld [vmem:[%s1629_s12 + $0x30] sm:$0xff] }
  0x9d   :  { %v156_v0 = vpack.c.bf16 %v152_v61, %v150_v60  ;;  %v1039_v60 = vld [vmem:[%s1627_s10 + $0x60] sm:$0xf]  ;;  %v1163_v61 = vld [vmem:[%s1627_s10 + $0x64] sm:$0xf0] }
  0x9e   :  { %v157_v1 = vpack.c.bf16 %v153_v63, %v151_v62  ;;  %v1052_v62 = vor.u32 %v1164_v56, %v1049_v59  ;;  %v1162_v63 = vld [vmem:[%s1627_s10 + $0x64] sm:$0xf]  ;;  %595 = vmatpush.bf16.msrb.mxu2 %v1048_v58  ;;  %v1180_v56 = vld [vmem:[%s1629_s12 + $0x70] sm:$0xff]  ;;  %v1171_v58 = vld [vmem:[%s1629_s12 + $0x28] sm:$0xff] }
  0x9f   :  { %300 = vmatmul.bf16.vlgmr.msra.gmra.mxu2 %v156_v0  ;;  %v1041_v0 = vld [vmem:[%s1627_s10 + $0x68] sm:$0xf0]  ;;  %792 = vmatpush.bf16.msra.mxu1 %v1180_v56 }
  0xa0   :  { %318 = vmatmul.bf16.vlgmr.msra.gmra.mxu3 %v157_v1  ;;  %v128_v2 = vpop.f32.mrf.mxu0  ;;  %v1040_v1 = vor.u32 %v1163_v61, %v1039_v60  ;;  %v1179_v59 = vld [vmem:[%s1629_s12 + $0x68] sm:$0xff] }
  0xa1   :  { %v146_v3 = vpop.f32.mrf.mxu1  ;;  %v129_v4 = vadd.f32 %v128_v2, %v63_v50  ;;  %613 = vmatpush.bf16.msrb.mxu3 %v1052_v62  ;;  %v1044_v2 = vor.u32 %v1162_v63, %v1041_v0  ;;  %v1170_v63 = vld [vmem:[%s1629_s12 + $0x20] sm:$0xff] }
  0xa2   :  { %v147_v5 = vadd.f32 %v146_v3, %v64_v51  ;;  %v1031_v3 = vld [vmem:[%s1627_s10 + $0x50] sm:$0xf]  ;;  %596 = vmatpush.bf16.msrb.mxu2 %v1040_v1  ;;  %v1178_v0 = vld [vmem:[%s1629_s12 + $0x60] sm:$0xff] }
  0xa3   :  { %v154_v6 = vmax.f32 %v129_v4, 0.0  ;;  %v1161_v4 = vld [vmem:[%s1627_s10 + $0x54] sm:$0xf0]  ;;  %793 = vmatpush.bf16.msra.mxu1 %v1179_v59 }
  0xa4   :  { %v155_v7 = vmax.f32 %v147_v5, 0.0  ;;  %v419_v5 = vld [vmem:[%s1628_s1] sm:$0xff] }
  0xa5   :  { %v158_v10 = vpack.c.bf16 %v154_v6, %v154_v6  ;;  %v1160_v6 = vld [vmem:[%s1627_s10 + $0x54] sm:$0xf]  ;;  %614 = vmatpush.bf16.msrb.mxu3 %v1044_v2 }
  0xa6   :  { %v159_v11 = vpack.c.bf16 %v155_v7, %v155_v7  ;;  %v1033_v7 = vld [vmem:[%s1627_s10 + $0x58] sm:$0xf0] }
  0xa7   :  { %794 = vmatpush.bf16.msra.mxu1 %v1178_v0 }
  0xa8   :  { %v130_v8 = vpop.f32.mrf.mxu0 }
  0xa9   :  { %v148_v9 = vpop.f32.mrf.mxu1  ;;  %v420_v8 = vld [vmem:[%s1628_s1 + $0x8] sm:$0xff] }
  0xaa   :  { %v1032_v9 = vor.u32 %v1161_v4, %v1031_v3  ;;  %v1169_v4 = vld [vmem:[%s1629_s12 + $0x18] sm:$0xff] }
  0xac   :  { %597 = vmatpush.bf16.msrb.mxu2 %v1032_v9 }
  0xaf   :  { %305 = vmatmul.bf16.gmra.mxu2 %v158_v10 }
  0xb0   :  { %323 = vmatmul.bf16.gmra.mxu3 %v159_v11  ;;  %v1036_v11 = vor.u32 %v1160_v6, %v1033_v7 }
  0xb2   :  { %615 = vmatpush.bf16.msrb.mxu3 %v1036_v11  ;;  %v1168_v11 = vld [vmem:[%s1629_s12 + $0x10] sm:$0xff] }
 0x122   :  { %v301_v16 = vpop.f32.mrf.mxu2 }
 0x123   :  { %v319_v18 = vpop.f32.mrf.mxu3  ;;  %v302_v19 = vadd.f32 %v1184_v17, %v301_v16  ;;  %v1025_v16 = vld [vmem:[%s1627_s10 + $0x48] sm:$0xf0] }
 0x125   :  { %v320_v21 = vadd.f32 %v319_v18, %v302_v19  ;;  %v1024_v18 = vor.u32 %v1159_v13, %v1023_v12  ;;  %v1176_v12 = vld [vmem:[%s1629_s12 + $0x50] sm:$0xff]  ;;  %v1167_v13 = vld [vmem:[%s1629_s12 + $0x8] sm:$0xff] }
 0x127   :  { %v328_v25 = vmax.f32 %v320_v21, 0.0  ;;  %v1028_v21 = vor.u32 %v1158_v15, %v1025_v16  ;;  %598 = vmatpush.bf16.msrb.mxu2 %v1024_v18  ;;  %v1166_v15 = vld [vmem:[%s1629_s12] sm:$0xff] }
 0x128   :  { %v1174_v16 = vld [vmem:[%s1629_s12 + $0x40] sm:$0xff] }
 0x129   :  { %616 = vmatpush.bf16.msrb.mxu3 %v1028_v21 }
 0x12a   :  { %v303_v20 = vpop.f32.mrf.mxu2 }
 0x12b   :  { %v304_v22 = vadd.f32 %v1184_v17, %v303_v20  ;;  %v321_v23 = vpop.f32.mrf.mxu3 }
 0x12d   :  { %v322_v24 = vadd.f32 %v321_v23, %v304_v22  ;;  %v1015_v22 = vld [vmem:[%s1627_s10 + $0x30] sm:$0xf]  ;;  %v1157_v23 = vld [vmem:[%s1627_s10 + $0x34] sm:$0xf0] }
 0x12f   :  { %v329_v26 = vmax.f32 %v322_v24, 0.0 }
 0x131   :  { %v331_v27 = vpack.c.bf16 %v329_v26, %v328_v25  ;;  %v1016_v25 = vor.u32 %v1157_v23, %v1015_v22  ;;  %v421_v26 = vld [vmem:[%s1628_s1 + $0x10] sm:$0xff] }
 0x132   :  { %v306_v28 = vpop.f32.mrf.mxu2 }
 0x133   :  { %409 = vmatmul.bf16.vlgmr.msrb.gmra.mxu0 %v331_v27  ;;  %v307_v29 = vadd.f32 %v1184_v17, %v306_v28  ;;  %v324_v30 = vpop.f32.mrf.mxu3  ;;  %599 = vmatpush.bf16.msrb.mxu2 %v1016_v25 }
 0x135   :  { %v325_v31 = vadd.f32 %v324_v30, %v307_v29 }
 0x137   :  { %v330_v33 = vmax.f32 %v325_v31, 0.0  ;;  %v1156_v31 = vld [vmem:[%s1627_s10 + $0x34] sm:$0xf] }
 0x139   :  { %v332_v35 = vpack.c.bf16 %v330_v33, %v330_v33 }
 0x13a   :  { %v308_v32 = vpop.f32.mrf.mxu2 }
 0x13b   :  { %v326_v34 = vpop.f32.mrf.mxu3  ;;  %v1017_v32 = vld [vmem:[%s1627_s10 + $0x38] sm:$0xf0] }
 0x13c   :  { %v1020_v33 = vor.u32 %v1156_v31, %v1017_v32  ;;  %v1007_v34 = vld [vmem:[%s1627_s10 + $0x20] sm:$0xf] }
 0x13e   :  { %617 = vmatpush.bf16.msrb.mxu3 %v1020_v33 }
 0x143   :  { %414 = vmatmul.bf16.gmra.mxu0 %v332_v35  ;;  %v1155_v35 = vld [vmem:[%s1627_s10 + $0x24] sm:$0xf0] }
 0x1b0   :  { %v410_v37 = vpop.f32.mrf.mxu0 }
 0x1b1   :  { %v1425_v38 = vadd.f32 %v1185_v36, %v410_v37  ;;  %v1008_v37 = vor.u32 %v1155_v35, %v1007_v34 }
 0x1b3   :  { %v422_v39 = vmul.f32 0.5, %v1425_v38  ;;  %600 = vmatpush.bf16.msrb.mxu2 %v1008_v37 }
 0x1b5   :  { %v425_v40 = vmul.f32 1.442695, %v422_v39  ;;  %v999_v39 = vld [vmem:[%s1627_s10 + $0x10] sm:$0xf] }
 0x1b7   :  { %1188 = vpow2.f32 %v425_v40  ;;  %v1153_v40 = vld [vmem:[%s1627_s10 + $0x14] sm:$0xf0] }
 0x1b8   :  { %v412_v41 = vpop.f32.mrf.mxu0 }
 0x1b9   :  { %v413_v42 = vadd.f32 %v1185_v36, %v412_v41 }
 0x1bb   :  { %v423_v43 = vmul.f32 0.5, %v413_v42  ;;  %829 = vrot.lane.b32.xlu2 %v413_v42, %s1206_s16 }
 0x1bd   :  { %v1189_v44 = vpop.eup %1188  ;;  %v427_v45 = vmul.f32 1.442695, %v423_v43  ;;  %v1152_v43 = vld [vmem:[%s1627_s10 + $0x14] sm:$0xf] }
 0x1be   :  { %434 = vrot.lane.b32.xlu0 %v1189_v44, %s1207_s17  ;;  %v1001_v44 = vld [vmem:[%s1627_s10 + $0x18] sm:$0xf0] }
 0x1bf   :  { %1190 = vpow2.f32 %v427_v45  ;;  %v1004_v45 = vor.u32 %v1152_v43, %v1001_v44  ;;  %v1187_v44 = vld [vmem:[%s1630_s13] ss:$0 sm:$0xff] }
 0x1c0   :  { %v415_v46 = vpop.f32.mrf.mxu0 }
 0x1c1   :  { %v1428_v47 = vadd.f32 %v1185_v36, %v415_v46  ;;  %v1154_v36 = vld [vmem:[%s1627_s10 + $0x24] sm:$0xf]  ;;  %v991_v46 = vld [vmem:[%s1627_s10] sm:$0xf] }
 0x1c3   :  { %v424_v48 = vmul.f32 0.5, %v1428_v47  ;;  %831 = vrot.lane.b32.xlu2 %v1428_v47, %s1206_s16 }
 0x1c5   :  { %v1191_v49 = vpop.eup %1190  ;;  %v429_v50 = vmul.f32 1.442695, %v424_v48  ;;  %v1150_v48 = vld [vmem:[%s1627_s10 + $0x4] sm:$0xf] }
 0x1c6   :  { %436 = vrot.lane.b32.xlu0 %v1191_v49, %s1207_s17 }
 0x1c7   :  { %1192 = vpow2.f32 %v429_v50  ;;  %v993_v50 = vld [vmem:[%s1627_s10 + $0x8] sm:$0xf0] }
 0x1c8   :  { %v417_v51 = vpop.f32.mrf.mxu0 }
 0x1c9   :  { %v996_v51 = vor.u32 %v1150_v48, %v993_v50 }
 0x1cd   :  { %v1193_v52 = vpop.eup %1192 }
 0x1ce   :  { %438 = vrot.lane.b32.xlu1 %v1193_v52, %s1207_s17  ;;  %v1173_v52 = vld [vmem:[%s1629_s12 + $0x38] sm:$0xff] }
 0x1cf   :  { %773 = vmatpush.bf16.msra.mxu0 %v1173_v52 }
 0x1d3   :  { %774 = vmatpush.bf16.msra.mxu0 %v1172_v55 }
 0x1d6   :  { %827 = vrot.lane.b32.xlu1 %v1425_v38, %s1206_s16 }
 0x1d7   :  { %775 = vmatpush.bf16.msra.mxu0 %v1171_v58 }
 0x1db   :  { %776 = vmatpush.bf16.msra.mxu0 %v1170_v63 }
 0x1df   :  { %777 = vmatpush.bf16.msra.mxu0 %v1169_v4 }
 0x1e3   :  { %778 = vmatpush.bf16.msra.mxu0 %v1168_v11 }
 0x1e7   :  { %779 = vmatpush.bf16.msra.mxu0 %v1167_v13 }
 0x1eb   :  { %780 = vmatpush.bf16.msra.mxu0 %v1166_v15 }
 0x215   :  { %v830_v11 = vpop.permute.xlu2 %829 }
 0x230   :  { %v435_v57 = vpop.permute.xlu0 %434 }
 0x231   :  { %v443_v10 = vmul.f32 %v435_v57, %v419_v5  ;;  %v1186_v57 = vld [vmem:[%s1625_s9] ss:$0 sm:$0xff] }
 0x233   :  { %v446_v19 = vadd.f32 %v443_v10, %v1425_v38  ;;  %v1009_v38 = vld [vmem:[%s1627_s10 + $0x28] sm:$0xf0]  ;;  %v1177_v10 = vld [vmem:[%s1629_s12 + $0x58] sm:$0xff] }
 0x234   :  { %v1012_v41 = vor.u32 %v1154_v36, %v1009_v38  ;;  %795 = vmatpush.bf16.msra.mxu1 %v1177_v10 }
 0x236   :  { %618 = vmatpush.bf16.msrb.mxu3 %v1012_v41 }
 0x238   :  { %v437_v14 = vpop.permute.xlu0 %436  ;;  %796 = vmatpush.bf16.msra.mxu1 %v1176_v12 }
 0x239   :  { %v444_v17 = vmul.f32 %v437_v14, %v420_v8  ;;  %v1175_v14 = vld [vmem:[%s1629_s12 + $0x48] sm:$0xff] }
 0x23a   :  { %619 = vmatpush.bf16.msrb.mxu3 %v1004_v45 }
 0x23b   :  { %v447_v20 = vadd.f32 %v444_v17, %v413_v42  ;;  %v1000_v42 = vor.u32 %v1153_v40, %v999_v39  ;;  %v509_v17 = vld [vmem:[%s1631_s11] sm:$0x3] }
 0x23c   :  { %797 = vmatpush.bf16.msra.mxu1 %v1175_v14  ;;  %v512_v21 = vperm.slane %v509_v17, 1 }
 0x23d   :  { %v449_v24 = vpack.c.bf16 %v447_v20, %v446_v19  ;;  %601 = vmatpush.bf16.msrb.mxu2 %v1000_v42  ;;  %v511_v20 = vperm.slane %v509_v17, 0 }
 0x23e   :  { %620 = vmatpush.bf16.msrb.mxu3 %v996_v51 }
 0x23f   :  { %987 = vmatmul.msk.bf16.vlgmr.msrb.gmra.mxu1 %vm463_vm1, %v449_v24 }
 0x240   :  { %v439_v27 = vpop.permute.xlu1 %438  ;;  %798 = vmatpush.bf16.msra.mxu1 %v1174_v16  ;;  %v832_v16 = vpop.permute.xlu2 %831 }
 0x241   :  { %v445_v28 = vmul.f32 %v439_v27, %v421_v26 }
 0x243   :  { %v448_v29 = vadd.f32 %v445_v28, %v1428_v47  ;;  %v1151_v47 = vld [vmem:[%s1627_s10 + $0x4] sm:$0xf0] }
 0x244   :  { %v992_v49 = vor.u32 %v1151_v47, %v991_v46 }
 0x245   :  { %v450_v30 = vpack.c.bf16 %v448_v29, %v448_v29 }
 0x246   :  { %602 = vmatpush.bf16.msrb.mxu2 %v992_v49 }
 0x24f   :  { %988 = vmatmul.msk.bf16.gmra.mxu1 %vm463_vm1, %v450_v30 }
 0x2bc   :  { %v479_v54 = vpop.f32.mrf.mxu1 }
 0x2bd   :  { %v480_v60 = vadd.f32 %v1186_v57, %v479_v54 }
 0x2bf   :  { %v488_v1 = vmax.f32 %v480_v60, 0.0 }
 0x2c4   :  { %v481_v61 = vpop.f32.mrf.mxu1 }
 0x2c5   :  { %v482_v62 = vadd.f32 %v1186_v57, %v481_v61 }
 0x2c7   :  { %v489_v2 = vmax.f32 %v482_v62, 0.0 }
 0x2c9   :  { %v491_v3 = vpack.c.bf16 %v489_v2, %v488_v1  ;;  %v828_v1 = vpop.permute.xlu1 %827 }
 0x2cb   :  { %603 = vmatmul.bf16.vlgmr.msrb.gmra.mxu2 %v491_v3  ;;  %621 = vmatmul.bf16.vlgmr.msrb.gmra.mxu3 %v491_v3 }
 0x2cc   :  { %v484_v5 = vpop.f32.mrf.mxu1 }
 0x2cd   :  { %v485_v6 = vadd.f32 %v1186_v57, %v484_v5 }
 0x2cf   :  { %v490_v8 = vmax.f32 %v485_v6, 0.0 }
 0x2d1   :  { %v492_v9 = vpack.c.bf16 %v490_v8, %v490_v8 }
 0x2d4   :  { %v486_v7 = vpop.f32.mrf.mxu1 }
 0x2db   :  { %608 = vmatmul.bf16.gmra.mxu2 %v492_v9  ;;  %626 = vmatmul.bf16.gmra.mxu3 %v492_v9 }
 0x34e   :  { %v604_v18 = vpop.f32.mrf.mxu2  ;;  %v622_v19 = vpop.f32.mrf.mxu3 }
 0x34f   :  { %v605_v22 = vadd.f32 %v604_v18, %v511_v20  ;;  %v623_v23 = vadd.f32 %v622_v19, %v512_v21 }
 0x351   :  { %v631_v28 = vmax.f32 %v605_v22, 0.0  ;;  %v632_v29 = vmax.f32 %v623_v23, 0.0 }
 0x356   :  { %v606_v24 = vpop.f32.mrf.mxu2  ;;  %v624_v25 = vpop.f32.mrf.mxu3 }
 0x357   :  { %v607_v26 = vadd.f32 %v606_v24, %v511_v20  ;;  %v625_v27 = vadd.f32 %v624_v25, %v512_v21 }
 0x359   :  { %v633_v30 = vmax.f32 %v607_v26, 0.0  ;;  %v634_v31 = vmax.f32 %v625_v27, 0.0 }
 0x35b   :  { %v637_v32 = vpack.c.bf16 %v633_v30, %v631_v28  ;;  %v638_v33 = vpack.c.bf16 %v634_v31, %v632_v29 }
 0x35d   :  { %781 = vmatmul.bf16.vlgmr.msra.gmra.mxu0 %v637_v32  ;;  %799 = vmatmul.bf16.vlgmr.msra.gmra.mxu1 %v638_v33 }
 0x35e   :  { %v609_v34 = vpop.f32.mrf.mxu2  ;;  %v627_v35 = vpop.f32.mrf.mxu3 }
 0x35f   :  { %v610_v36 = vadd.f32 %v609_v34, %v511_v20  ;;  %v628_v37 = vadd.f32 %v627_v35, %v512_v21 }
 0x361   :  { %v635_v40 = vmax.f32 %v610_v36, 0.0  ;;  %v636_v41 = vmax.f32 %v628_v37, 0.0 }
 0x363   :  { %v639_v42 = vpack.c.bf16 %v635_v40, %v635_v40  ;;  %v640_v43 = vpack.c.bf16 %v636_v41, %v636_v41 }
 0x366   :  { %v611_v38 = vpop.f32.mrf.mxu2  ;;  %v629_v39 = vpop.f32.mrf.mxu3 }
 0x36d   :  { %786 = vmatmul.bf16.gmra.mxu0 %v639_v42  ;;  %804 = vmatmul.bf16.gmra.mxu1 %v640_v43 }
 0x3da   :  { %v782_v45 = vpop.f32.mrf.mxu0  ;;  %v800_v46 = vpop.f32.mrf.mxu1 }
 0x3db   :  { %v783_v47 = vadd.f32 %v1187_v44, %v782_v45 }
 0x3dd   :  { %v801_v48 = vadd.f32 %v800_v46, %v783_v47 }
 0x3df   :  { %v809_v49 = vsub.f32 0.0, %v801_v48 }
 0x3e1   :  { %v812_v50 = vmul.f32 1.442695, %v809_v49 }
 0x3e2   :  { %v784_v51 = vpop.f32.mrf.mxu0  ;;  %v802_v52 = vpop.f32.mrf.mxu1 }
 0x3e3   :  { %1194 = vpow2.f32 %v812_v50  ;;  %v785_v53 = vadd.f32 %v1187_v44, %v784_v51 }
 0x3e5   :  { %v803_v54 = vadd.f32 %v802_v52, %v785_v53 }
 0x3e7   :  { %v810_v55 = vsub.f32 0.0, %v803_v54 }
 0x3e9   :  { %v1195_v56 = vpop.eup %1194  ;;  %v814_v57 = vmul.f32 1.442695, %v810_v55 }
 0x3ea   :  { %v818_v58 = vadd.f32 1.0, %v1195_v56  ;;  %v787_v59 = vpop.f32.mrf.mxu0  ;;  %v805_v60 = vpop.f32.mrf.mxu1 }
 0x3eb   :  { %1196 = vpow2.f32 %v814_v57  ;;  %v788_v61 = vadd.f32 %v1187_v44, %v787_v59 }
 0x3ec   :  { %1198 = vrcp.f32 %v818_v58 }
 0x3ed   :  { %v806_v62 = vadd.f32 %v805_v60, %v788_v61 }
 0x3ef   :  { %v811_v63 = vsub.f32 0.0, %v806_v62 }
 0x3f1   :  { %v1197_v0 = vpop.eup %1196  ;;  %v816_v2 = vmul.f32 1.442695, %v811_v63 }
 0x3f2   :  { %v1199_v3 = vpop.eup %1198  ;;  %v819_v4 = vadd.f32 1.0, %v1197_v0  ;;  %v789_v5 = vpop.f32.mrf.mxu0 }
 0x3f3   :  { %v807_v6 = vpop.f32.mrf.mxu1  ;;  %v836_v7 = vsel %vm107_vm0, %v1199_v3, %v828_v1  ;;  %1200 = vpow2.f32 %v816_v2 }
 0x3f4   :  { %v840_v8 = vsel %vm839_vm2, %v836_v7, %v828_v1  ;;  %1202 = vrcp.f32 %v819_v4 }
 0x3f5   :  { %844 = vst.msk [vmem:[%s1632_s14] sm:$0xff] %vm843_vm3, %v840_v8 }
 0x3f9   :  { %v1201_v9 = vpop.eup %1200 }
 0x3fa   :  { %v1203_v10 = vpop.eup %1202  ;;  %v820_v12 = vadd.f32 1.0, %v1201_v9 }
 0x3fb   :  { %v837_v13 = vsel %vm107_vm0, %v1203_v10, %v830_v11 }
 0x3fc   :  { %v841_v14 = vsel %vm839_vm2, %v837_v13, %v830_v11  ;;  %1204 = vrcp.f32 %v820_v12 }
 0x3fd   :  { %845 = vst.msk [vmem:[%s1632_s14 + $0x8] sm:$0xff] %vm843_vm3, %v841_v14 }
 0x402   :  { %v1205_v15 = vpop.eup %1204 }
 0x403   :  { %v838_v17 = vsel %vm107_vm0, %v1205_v15, %v832_v16 }
 0x404   :  { %v842_v18 = vsel %vm839_vm2, %v838_v17, %v832_v16 }
 0x405   :  { %846 = vst.msk [vmem:[%s1632_s14 + $0x10] sm:$0xff] %vm843_vm3, %v842_v18 }

</bundles_post_ra>
